<compile_context>
chip_gen: v5e
topology: v5e:2x2
jax: 0.10.0
libtpu: 0.0.40
codegen_flags: <defaults>
</compile_context>

<pallas_src>
import functools

import jax
import jax.numpy as jnp
from jax.experimental import pallas as pl
from jax.experimental.pallas import tpu as pltpu

LANE = 128                       # TPU lane width  (last-dim alignment)
SUB = 8                          # sublane width   (second-to-last alignment)
EPS = 1e-5
_VMEM_LIMIT = 32 * 1024 * 1024   # explicit scoped-VMEM budget (safe v5e..v7x)


# ------------------------------ small helpers --------------------------------

def _pad_to(n, m):
    return ((n + m - 1) // m) * m


def _pad_axis(a, axis, size):
    if a.shape[axis] == size:
        return a
    pad = [(0, 0)] * a.ndim
    pad[axis] = (0, size - a.shape[axis])
    return jnp.pad(a, pad)


def _row_tile(m):
    """Row-tile size for the M = N*Ho*Wo dimension (bigger for real shapes)."""
    if m >= 1024:
        return 512
    if m >= 512:
        return 256
    return _pad_to(m, SUB)


# --------------------------------- kernels ------------------------------------

def _matmul_stats_kernel(p_ref, w_ref, y_ref, sum_ref, sq_ref):
    """conv-as-matmul row tile (bf16 x bf16 -> f32) + per-channel sum / sum-sq.

    Grid axis 0 walks row tiles ("arbitrary"): the (1, C) stat outputs keep a
    constant block index, stay VMEM-resident and accumulate across the axis.
    """
    y = jnp.dot(p_ref[...], w_ref[...], preferred_element_type=jnp.float32)
    y_ref[...] = y

    @pl.when(pl.program_id(0) == 0)
    def _init():
        sum_ref[...] = jnp.zeros_like(sum_ref)
        sq_ref[...] = jnp.zeros_like(sq_ref)

    sum_ref[...] += jnp.sum(y, axis=0, keepdims=True)
    sq_ref[...] += jnp.sum(y * y, axis=0, keepdims=True)


def _bn_relu_kernel(inv_m, y_ref, sum_ref, sq_ref, g_ref, b_ref, o_ref):
    """Phase-2 BN (training statistics) + affine + ReLU on one row tile."""
    mean = sum_ref[...] * inv_m
    var = sq_ref[...] * inv_m - mean * mean
    scale = g_ref[...] * jax.lax.rsqrt(var + EPS)
    shift = b_ref[...] - mean * scale
    o_ref[...] = jnp.maximum(y_ref[...] * scale + shift, 0.0).astype(o_ref.dtype)


def _bn_add_relu_kernel(inv_m, y_ref, sum_ref, sq_ref, g_ref, b_ref, r_ref, o_ref):
    """Phase-2 BN + identity residual + ReLU (no-downsample block)."""
    mean = sum_ref[...] * inv_m
    var = sq_ref[...] * inv_m - mean * mean
    scale = g_ref[...] * jax.lax.rsqrt(var + EPS)
    shift = b_ref[...] - mean * scale
    o_ref[...] = jnp.maximum(y_ref[...] * scale + shift + r_ref[...], 0.0
                             ).astype(o_ref.dtype)


def _bn_bnsk_add_relu_kernel(inv_m, y_ref, sum_ref, sq_ref, g_ref, b_ref,
                             ys_ref, sums_ref, sqs_ref, gs_ref, bs_ref, o_ref):
    """Phase-2: BN(main) + BN(1x1-stride-2 skip) + add + ReLU (downsample)."""
    mean = sum_ref[...] * inv_m
    var = sq_ref[...] * inv_m - mean * mean
    scale = g_ref[...] * jax.lax.rsqrt(var + EPS)
    shift = b_ref[...] - mean * scale

    mean_s = sums_ref[...] * inv_m
    var_s = sqs_ref[...] * inv_m - mean_s * mean_s
    scale_s = gs_ref[...] * jax.lax.rsqrt(var_s + EPS)
    shift_s = bs_ref[...] - mean_s * scale_s

    o_ref[...] = jnp.maximum(
        y_ref[...] * scale + shift + ys_ref[...] * scale_s + shift_s, 0.0
    ).astype(o_ref.dtype)


# ---------------------------- pallas_call wrappers ----------------------------

def _conv_matmul_stats(patches, weights, tm):
    """Row-tiled (Mp, K) @ (K, C) matmul with fused per-channel BN statistics."""
    mp, k = patches.shape
    c = weights.shape[1]
    return pl.pallas_call(
        _matmul_stats_kernel,
        out_shape=(jax.ShapeDtypeStruct((mp, c), jnp.float32),   # raw conv out
                   jax.ShapeDtypeStruct((1, c), jnp.float32),    # sum over rows
                   jax.ShapeDtypeStruct((1, c), jnp.float32)),   # sum of squares
        grid=(mp // tm,),
        in_specs=[pl.BlockSpec((tm, k), lambda i: (i, 0)),
                  pl.BlockSpec((k, c), lambda i: (0, 0))],
        out_specs=(pl.BlockSpec((tm, c), lambda i: (i, 0)),
                   pl.BlockSpec((1, c), lambda i: (0, 0)),
                   pl.BlockSpec((1, c), lambda i: (0, 0))),
        compiler_params=pltpu.CompilerParams(
            dimension_semantics=("arbitrary",),   # stats accumulate across it
            vmem_limit_bytes=_VMEM_LIMIT),
    )(patches, weights)


def _rowwise_call(kernel_fn, args, mp, c, tm, out_dtype):
    """Row-tiled elementwise pallas_call; `args` = [(array, is_row_tiled), ...]."""
    in_specs, operands = [], []
    for arr, tiled in args:
        operands.append(arr)
        if tiled:
            in_specs.append(pl.BlockSpec((tm, c), lambda i: (i, 0)))
        else:
            in_specs.append(pl.BlockSpec(arr.shape, lambda i: (0, 0)))
    return pl.pallas_call(
        kernel_fn,
        out_shape=jax.ShapeDtypeStruct((mp, c), out_dtype),
        grid=(mp // tm,),
        in_specs=in_specs,
        out_specs=pl.BlockSpec((tm, c), lambda i: (i, 0)),
        compiler_params=pltpu.CompilerParams(
            dimension_semantics=("parallel",),    # independent tiles (v7x 2 TCs)
            vmem_limit_bytes=_VMEM_LIMIT),
    )(*operands)


# --------------------------------- JAX glue -----------------------------------

def _im2col(x_nhwc, stride):
    """3x3 / pad=1 patch extraction -> (N*Ho*Wo, 9*C), kept in x's dtype."""
    n, h, w, c = x_nhwc.shape
    xp = jnp.pad(x_nhwc, ((0, 0), (1, 1), (1, 1), (0, 0)))
    ho = (h + 2 - 3) // stride + 1
    wo = (w + 2 - 3) // stride + 1
    cols = []
    for kh in range(3):
        for kw in range(3):
            cols.append(xp[:, kh:kh + stride * (ho - 1) + 1:stride,
                            kw:kw + stride * (wo - 1) + 1:stride, :])
    patches = jnp.concatenate(cols, axis=-1)
    return patches.reshape(n * ho * wo, 9 * c), (n, ho, wo)


def _prep_weight(w_oihw, kpad, cpad):
    """OIHW conv weight -> (K, Cout) matmul RHS, zero-padded, bf16."""
    co, ci, kh, kw = w_oihw.shape
    wm = jnp.transpose(w_oihw, (2, 3, 1, 0)).reshape(kh * kw * ci, co)
    return _pad_axis(_pad_axis(wm, 0, kpad), 1, cpad).astype(jnp.bfloat16)


def _prep_affine(v, cpad):
    """(C,) gamma/beta -> (1, Cpad) f32, zero-padded channels."""
    return _pad_axis(v.reshape(1, -1).astype(jnp.float32), 1, cpad)


def make_params(key, cin, cmid, downsample):
    ks = jax.random.split(key, 9)
    p = {
        "w1": 0.1 * jax.random.normal(ks[0], (cmid, cin, 3, 3), jnp.float32),
        "g1": 1.0 + 0.1 * jax.random.normal(ks[1], (cmid,), jnp.float32),
        "b1": 0.1 * jax.random.normal(ks[2], (cmid,), jnp.float32),
        "w2": 0.1 * jax.random.normal(ks[3], (cmid, cmid, 3, 3), jnp.float32),
        "g2": 1.0 + 0.1 * jax.random.normal(ks[4], (cmid,), jnp.float32),
        "b2": 0.1 * jax.random.normal(ks[5], (cmid,), jnp.float32),
    }
    if downsample:
        p["wsk"] = 0.1 * jax.random.normal(ks[6], (cmid, cin, 1, 1), jnp.float32)
        p["gsk"] = 1.0 + 0.1 * jax.random.normal(ks[7], (cmid,), jnp.float32)
        p["bsk"] = 0.1 * jax.random.normal(ks[8], (cmid,), jnp.float32)
    return p


def resblock_tier2_forward(x_nchw, params, downsample):
    """Pallas-backed forward. x_nchw: (N, Cin, H, W) f32 -> (N, Cmid, Ho, Wo) f32."""
    x = jnp.transpose(x_nchw, (0, 2, 3, 1)).astype(jnp.float32)   # NCHW -> NHWC
    n, h, w, cin = x.shape
    cmid = params["w1"].shape[0]
    cpad = _pad_to(cmid, LANE)                 # lane-dense output channels
    stride = 2 if downsample else 1
    x_bf = x.astype(jnp.bfloat16)              # MXU inputs in bf16

    # ------------------------- conv1 (+ BN1 statistics) ----------------------
    p1, (_, ho, wo) = _im2col(x_bf, stride)
    m = n * ho * wo
    tm = _row_tile(m)
    mp = _pad_to(m, tm)
    k1p = _pad_to(9 * cin, LANE)
    p1 = _pad_axis(_pad_axis(p1, 1, k1p), 0, mp)
    w1 = _prep_weight(params["w1"], k1p, cpad)
    y1_raw, s1, q1 = _conv_matmul_stats(p1, w1, tm)

    inv_m = 1.0 / float(m)                     # real row count (padded rows = 0)

    # ------------------------------- BN1 + ReLU ------------------------------
    y1 = _rowwise_call(
        functools.partial(_bn_relu_kernel, inv_m),
        [(y1_raw, True), (s1, False), (q1, False),
         (_prep_affine(params["g1"], cpad), False),
         (_prep_affine(params["b1"], cpad), False)],
        mp, cpad, tm, jnp.bfloat16)            # bf16: feeds conv2's MXU directly

    # ------------------------- conv2 (+ BN2 statistics) ----------------------
    y1 = y1[:m, :cmid].reshape(n, ho, wo, cmid)   # strip row/channel padding
    p2, _ = _im2col(y1, 1)
    k2p = _pad_to(9 * cmid, LANE)
    p2 = _pad_axis(_pad_axis(p2, 1, k2p), 0, mp)
    w2 = _prep_weight(params["w2"], k2p, cpad)
    y2_raw, s2, q2 = _conv_matmul_stats(p2, w2, tm)

    g2 = _prep_affine(params["g2"], cpad)
    b2 = _prep_affine(params["b2"], cpad)

    if downsample:
        # 1x1 stride-2 conv + BN on the skip path (its own matmul+stats pass).
        # TODO(synk): gather the stride-2 taps via a strided index_map / pl.ds
        #             inside the kernel instead of this wrapper-side slice.
        ksp = _pad_to(cin, LANE)
        xs = x_bf[:, ::2, ::2, :].reshape(m, cin)
        xs = _pad_axis(_pad_axis(xs, 1, ksp), 0, mp)
        wsk = _prep_weight(params["wsk"], ksp, cpad)
        ysk_raw, ssk, qsk = _conv_matmul_stats(xs, wsk, tm)
        out = _rowwise_call(
            functools.partial(_bn_bnsk_add_relu_kernel, inv_m),
            [(y2_raw, True), (s2, False), (q2, False), (g2, False), (b2, False),
             (ysk_raw, True), (ssk, False), (qsk, False),
             (_prep_affine(params["gsk"], cpad), False),
             (_prep_affine(params["bsk"], cpad), False)],
            mp, cpad, tm, jnp.float32)
    else:
        resid = _pad_axis(_pad_axis(x.reshape(m, cin), 1, cpad), 0, mp)  # f32 id
        out = _rowwise_call(
            functools.partial(_bn_add_relu_kernel, inv_m),
            [(y2_raw, True), (s2, False), (q2, False), (g2, False), (b2, False),
             (resid, True)],
            mp, cpad, tm, jnp.float32)

    out = out[:m, :cmid].reshape(n, ho, wo, cmid)
    return jnp.transpose(out, (0, 3, 1, 2))    # NHWC -> NCHW


# ---------------------------- pure-JAX references ------------------------------

def _ref_forward(x_nchw, params, downsample, matmul_dtype=jnp.float32):
    """Reference.  matmul_dtype=bf16 mirrors the kernel's MXU-input precision."""
    x = jnp.transpose(x_nchw, (0, 2, 3, 1)).astype(jnp.float32)

    def conv(v, w_oihw, stride, pad):
        w = jnp.transpose(w_oihw, (2, 3, 1, 0))
        return jax.lax.conv_general_dilated(
            v.astype(matmul_dtype), w.astype(matmul_dtype),
            (stride, stride), ((pad, pad), (pad, pad)),
            dimension_numbers=("NHWC", "HWIO", "NHWC"),
            preferred_element_type=jnp.float32)

    def bn(y, g, b, eps=EPS):
        mean = jnp.mean(y, axis=(0, 1, 2), keepdims=True)
        var = jnp.mean((y - mean) ** 2, axis=(0, 1, 2), keepdims=True)
        return (y - mean) * jax.lax.rsqrt(var + eps) * g + b

    if downsample:
        identity = bn(conv(x, params["wsk"], 2, 0), params["gsk"], params["bsk"])
        s = 2
    else:
        identity = x
        s = 1
    y = jnp.maximum(bn(conv(x, params["w1"], s, 1), params["g1"], params["b1"]), 0.0)
    y = bn(conv(y, params["w2"], 1, 1), params["g2"], params["b2"])
    y = jnp.maximum(y + identity, 0.0)
    return jnp.transpose(y, (0, 3, 1, 2))


# ------------------------------------ main -------------------------------------

if __name__ == "__main__":
    key = jax.random.PRNGKey(0)
    kx, kp1, kp2 = jax.random.split(key, 3)

    x = jax.random.normal(kx, (2, 4, 16, 16), jnp.float32)

    # Case 1: downsample block (intermediate_channels == 2 * in_channels).
    params_ds = make_params(kp1, cin=4, cmid=8, downsample=True)
    out_ds = jax.block_until_ready(resblock_tier2_forward(x, params_ds, True))
    assert out_ds.shape == (2, 8, 8, 8), out_ds.shape
    ref_bf = _ref_forward(x, params_ds, True, matmul_dtype=jnp.bfloat16)
    ref_f32 = _ref_forward(x, params_ds, True)
    assert jnp.allclose(out_ds, ref_bf, atol=1e-2, rtol=1e-2), "downsample vs bf16 ref"
    assert jnp.allclose(out_ds, ref_f32, atol=2e-1, rtol=2e-1), "downsample vs f32 ref"

    # Case 2: plain block (identity skip, intermediate_channels == in_channels).
    params_id = make_params(kp2, cin=4, cmid=4, downsample=False)
    out_id = jax.block_until_ready(resblock_tier2_forward(x, params_id, False))
    assert out_id.shape == (2, 4, 16, 16), out_id.shape
    ref_bf = _ref_forward(x, params_id, False, matmul_dtype=jnp.bfloat16)
    ref_f32 = _ref_forward(x, params_id, False)
    assert jnp.allclose(out_id, ref_bf, atol=1e-2, rtol=1e-2), "identity vs bf16 ref"
    assert jnp.allclose(out_id, ref_f32, atol=2e-1, rtol=2e-1), "identity vs f32 ref"

    print("KERNEL_OK")
</pallas_src>

<mosaic_0001>
module attributes {stable_mosaic.version = 11 : i64} {
  func.func @_matmul_stats_kernel(%arg0: i32, %arg1: memref<128x128xbf16, #tpu.memory_space<vmem>>, %arg2: memref<128x128xbf16, #tpu.memory_space<vmem>>, %arg3: memref<128x128xf32, #tpu.memory_space<vmem>>, %arg4: memref<1x128xf32, #tpu.memory_space<vmem>>, %arg5: memref<1x128xf32, #tpu.memory_space<vmem>>) attributes {dimension_semantics = [#tpu.dimension_semantics<arbitrary>], iteration_bounds = array<i64: 1>, scalar_prefetch = 0 : i64, scratch_operands = 0 : i64, tpu.core_type = #tpu.core_type<tc>, window_params = [{transform_indices = @transform_0, window_bounds = array<i64: 128, 128>}, {pipeline_mode = #tpu.pipeline_mode<synchronous>, transform_indices = @transform_1, window_bounds = array<i64: 128, 128>}, {transform_indices = @transform_2, window_bounds = array<i64: 128, 128>}, {pipeline_mode = #tpu.pipeline_mode<synchronous>, transform_indices = @transform_3, window_bounds = array<i64: 1, 128>}, {pipeline_mode = #tpu.pipeline_mode<synchronous>, transform_indices = @transform_4, window_bounds = array<i64: 1, 128>}]} {
    %c0 = arith.constant 0 : index
    %c0_0 = arith.constant 0 : index
    %0 = vector.load %arg1[%c0, %c0_0] : memref<128x128xbf16, #tpu.memory_space<vmem>>, vector<128x128xbf16>
    %c0_1 = arith.constant 0 : index
    %c0_2 = arith.constant 0 : index
    %1 = vector.load %arg2[%c0_1, %c0_2] : memref<128x128xbf16, #tpu.memory_space<vmem>>, vector<128x128xbf16>
    %cst = arith.constant dense<0.000000e+00> : vector<128x128xf32>
    %2 = tpu.matmul %0, %1, %cst {dimension_numbers = #tpu.dot_dimension_numbers<[1], [0], [0], [1], [0, 0, 1, 1], [], []>} : vector<128x128xbf16>, vector<128x128xbf16>, vector<128x128xf32> -> vector<128x128xf32>
    %c0_3 = arith.constant 0 : index
    %c0_4 = arith.constant 0 : index
    %3 = vector.load %arg3[%c0_3, %c0_4] : memref<128x128xf32, #tpu.memory_space<vmem>>, vector<128x128xf32>
    tpu.vector_store %arg3[%c0_3, %c0_4], %2 {strides = array<i32>} : memref<128x128xf32, #tpu.memory_space<vmem>>, vector<128x128xf32>,
    %c0_i32 = arith.constant 0 : i32
    %4 = arith.cmpi eq, %arg0, %c0_i32 : i32
    %5 = arith.extui %4 : i1 to i32
    %c0_i32_5 = arith.constant 0 : i32
    %6 = arith.cmpi ne, %5, %c0_i32_5 : i32
    scf.if %6 {
      %cst_16 = arith.constant 0.000000e+00 : f32
      %18 = vector.broadcast %cst_16 : f32 to vector<1x128xf32>
      %c0_17 = arith.constant 0 : index
      %c0_18 = arith.constant 0 : index
      %19 = vector.load %arg4[%c0_17, %c0_18] : memref<1x128xf32, #tpu.memory_space<vmem>>, vector<1x128xf32>
      tpu.vector_store %arg4[%c0_17, %c0_18], %18 {strides = array<i32>} : memref<1x128xf32, #tpu.memory_space<vmem>>, vector<1x128xf32>,
      %cst_19 = arith.constant 0.000000e+00 : f32
      %20 = vector.broadcast %cst_19 : f32 to vector<1x128xf32>
      %c0_20 = arith.constant 0 : index
      %c0_21 = arith.constant 0 : index
      %21 = vector.load %arg5[%c0_20, %c0_21] : memref<1x128xf32, #tpu.memory_space<vmem>>, vector<1x128xf32>
      tpu.vector_store %arg5[%c0_20, %c0_21], %20 {strides = array<i32>} : memref<1x128xf32, #tpu.memory_space<vmem>>, vector<1x128xf32>,
    } else {
    }
    %c0_6 = arith.constant 0 : index
    %c0_7 = arith.constant 0 : index
    %7 = vector.load %arg4[%c0_6, %c0_7] : memref<1x128xf32, #tpu.memory_space<vmem>>, vector<1x128xf32>
    %cst_8 = arith.constant dense<0.000000e+00> : vector<128xf32>
    %8 = vector.multi_reduction <add>, %2, %cst_8 [0] : vector<128x128xf32> to vector<128xf32>
    %9 = vector.shape_cast %8 : vector<128xf32> to vector<1x128xf32>
    %10 = arith.addf %7, %9 : vector<1x128xf32>
    %c0_9 = arith.constant 0 : index
    %c0_10 = arith.constant 0 : index
    %11 = vector.load %arg4[%c0_9, %c0_10] : memref<1x128xf32, #tpu.memory_space<vmem>>, vector<1x128xf32>
    tpu.vector_store %arg4[%c0_9, %c0_10], %10 {strides = array<i32>} : memref<1x128xf32, #tpu.memory_space<vmem>>, vector<1x128xf32>,
    %c0_11 = arith.constant 0 : index
    %c0_12 = arith.constant 0 : index
    %12 = vector.load %arg5[%c0_11, %c0_12] : memref<1x128xf32, #tpu.memory_space<vmem>>, vector<1x128xf32>
    %13 = arith.mulf %2, %2 : vector<128x128xf32>
    %cst_13 = arith.constant dense<0.000000e+00> : vector<128xf32>
    %14 = vector.multi_reduction <add>, %13, %cst_13 [0] : vector<128x128xf32> to vector<128xf32>
    %15 = vector.shape_cast %14 : vector<128xf32> to vector<1x128xf32>
    %16 = arith.addf %12, %15 : vector<1x128xf32>
    %c0_14 = arith.constant 0 : index
    %c0_15 = arith.constant 0 : index
    %17 = vector.load %arg5[%c0_14, %c0_15] : memref<1x128xf32, #tpu.memory_space<vmem>>, vector<1x128xf32>
    tpu.vector_store %arg5[%c0_14, %c0_15], %16 {strides = array<i32>} : memref<1x128xf32, #tpu.memory_space<vmem>>, vector<1x128xf32>,
    return
  }
  func.func @transform_0(%arg0: i32) -> (i32, i32) {
    %c0_i32 = arith.constant 0 : i32
    %c0_i32_0 = arith.constant 0 : i32
    return %arg0, %c0_i32 : i32, i32
  }
  func.func @transform_1(%arg0: i32) -> (i32, i32) {
    %c0_i32 = arith.constant 0 : i32
    %c0_i32_0 = arith.constant 0 : i32
    %c0_i32_1 = arith.constant 0 : i32
    return %c0_i32, %c0_i32_0 : i32, i32
  }
  func.func @transform_2(%arg0: i32) -> (i32, i32) {
    %c0_i32 = arith.constant 0 : i32
    %c0_i32_0 = arith.constant 0 : i32
    return %arg0, %c0_i32 : i32, i32
  }
  func.func @transform_3(%arg0: i32) -> (i32, i32) {
    %c0_i32 = arith.constant 0 : i32
    %c0_i32_0 = arith.constant 0 : i32
    %c0_i32_1 = arith.constant 0 : i32
    return %c0_i32, %c0_i32_0 : i32, i32
  }
  func.func @transform_4(%arg0: i32) -> (i32, i32) {
    %c0_i32 = arith.constant 0 : i32
    %c0_i32_0 = arith.constant 0 : i32
    %c0_i32_1 = arith.constant 0 : i32
    return %c0_i32, %c0_i32_0 : i32, i32
  }
}

</mosaic_0001>

<bundles_post_ra>
// kernel: tpu_custom_call.1
= control target key start
LH: loop header
LB: loop body
LE: loop exit
PB: predicated region body
PF: predicated region fallthrough
CT: control target
= control target key end

     0   :  { %10 = vsyncpa [#allocation3], 0  ;;  %s666_s0 = inlined_call_operand.hbm [shape: bf16[128,128], index: 0, kind: input, shape index: {}]   ;;  %s667_s1 = inlined_call_operand.hbm [shape: bf16[128,128], index: 1, kind: input, shape index: {}]   ;;  %s668_s2 = inlined_call_operand.hbm [shape: f32[128,128], index: 2, kind: output, shape index: {0}]   ;;  %s669_s3 = inlined_call_operand.hbm [shape: f32[1,128], index: 3, kind: output, shape index: {1}]   ;;  %s670_s4 = inlined_call_operand.hbm [shape: f32[1,128], index: 4, kind: output, shape index: {2}]  }
   0x1   :  { %11 = vsyncpa [#allocation6], 0 }
   0x2   :  { %12 = vsyncpa [#allocation4], 0 }
   0x3   :  { %13 = vsyncpa [#allocation9], 0  ;;  %s18_s17 = sshll.u32 %s666_s0, 4  ;;  %s604_s18 = smov [#allocation2]   ;;  %s19_s17 = int_to_ptr.hbm [resolvable:$true] %s18_s17 }
   0x4   :  { %s20_s19 = sshll.u32 %s604_s18, 4  ;;  %s31_s22 = sshll.u32 %s667_s1, 4  ;;  %s21_s19 = int_to_ptr.vmem [resolvable:$true] %s20_s19  ;;  %s32_s22 = int_to_ptr.hbm [resolvable:$true] %s31_s22 }
   0x5   :  { %s605_s23 = smov 64   ;;  %s606_s24 = smov 4  }
   0x6   :  { %26 = dma.hbm_to_vmem [thread:$0]  %s19_s17, 1024, %s21_s19, [#allocation3], %s605_s23, %s605_s23, %s606_s24  }
   0x7   :  { %s607_s25 = smov [#allocation5]  }
   0x8   :  { %s33_s26 = sshll.u32 %s607_s25, 4  ;;  %s34_s26 = int_to_ptr.vmem [resolvable:$true] %s33_s26 }
   0x9   :  { %39 = dma.hbm_to_vmem [thread:$0]  %s32_s22, 1024, %s34_s26, [#allocation6], %s605_s23, %s605_s23, %s606_s24  }
   0xa   :  { %596 = dma.done.wait [#allocation3], 1024  }
   0xb   :  { %597 = vsyncadd [#allocation3], 4294966272 }
   0xc   :  { %598 = dma.done.wait [#allocation6], 1024  }
   0xd   :  { %599 = vsyncadd [#allocation6], 4294966272  ;;  %v441_v0 = vld [vmem:[#allocation5 + $0x38] sm:$0xff]  ;;  %v440_v1 = vld [vmem:[#allocation5 + $0x30] sm:$0xff]  ;;  %s608_s0 = smov [#allocation7]   ;;  %s317_s29 = sshll.u32 %s668_s2, 4  ;;  %s318_s29 = int_to_ptr.hbm [resolvable:$true] %s317_s29 }
   0xe   :  { %176 = vmatpush.bf16.msra.mxu0 %v441_v0  ;;  %442 = vmatpush.bf16.msra.mxu1 %v441_v0  ;;  %v439_v2 = vld [vmem:[#allocation5 + $0x28] sm:$0xff]  ;;  %v438_v3 = vld [vmem:[#allocation5 + $0x20] sm:$0xff]  ;;  %v437_v4 = vld [vmem:[#allocation5 + $0x18] sm:$0xff]  ;;  %s315_s1 = sshll.u32 %s608_s0, 4  ;;  %v609_v42 = vmov 0.0   ;;  %s610_s30 = smov 128   ;;  %s316_s1 = int_to_ptr.vmem [resolvable:$true] %s315_s1 }
   0xf   :  { %443 = vmatpush.bf16.msra.mxu2 %v441_v0  ;;  %444 = vmatpush.bf16.msra.mxu3 %v441_v0  ;;  %v436_v5 = vld [vmem:[#allocation5 + $0x10] sm:$0xff]  ;;  %v435_v6 = vld [vmem:[#allocation5 + $0x8] sm:$0xff]  ;;  %v434_v7 = vld [vmem:[#allocation5] sm:$0xff]  ;;  %245 = vst [vmem:[#allocation8] sm:$0x1] %v609_v42  ;;  %s611_s2 = smov 8  }
  0x10   :  { %v426_v8 = vld [vmem:[#allocation2] sm:$0xff]  ;;  %v428_v9 = vld [vmem:[#allocation2 + $0x10] sm:$0xff]  ;;  %v427_v12 = vld [vmem:[#allocation2 + $0x8] sm:$0xff]  ;;  %246 = vst [vmem:[#allocation10] sm:$0x1] %v609_v42  ;;  %s612_s5 = smov [#allocation8]  }
  0x11   :  { %v430_v10 = vld [vmem:[#allocation2 + $0x20] sm:$0xff]  ;;  %v432_v11 = vld [vmem:[#allocation2 + $0x30] sm:$0xff]  ;;  %v429_v13 = vld [vmem:[#allocation2 + $0x18] sm:$0xff]  ;;  %s329_s6 = sshll.u32 %s612_s5, 4  ;;  %s331_s9 = sshll.u32 %s669_s3, 4  ;;  %s330_s6 = int_to_ptr.vmem [resolvable:$true] %s329_s6  ;;  %s332_s9 = int_to_ptr.hbm [resolvable:$true] %s331_s9 }
  0x12   :  { %177 = vmatpush.bf16.msra.mxu0 %v440_v1  ;;  %445 = vmatpush.bf16.msra.mxu1 %v440_v1  ;;  %v431_v14 = vld [vmem:[#allocation2 + $0x28] sm:$0xff]  ;;  %v433_v15 = vld [vmem:[#allocation2 + $0x38] sm:$0xff]  ;;  %s613_s10 = smov [#allocation10]   ;;  %s342_s14 = sshll.u32 %s670_s4, 4  ;;  %s343_s14 = int_to_ptr.hbm [resolvable:$true] %s342_s14 }
  0x13   :  { %446 = vmatpush.bf16.msra.mxu2 %v440_v1  ;;  %447 = vmatpush.bf16.msra.mxu3 %v440_v1  ;;  %s340_s11 = sshll.u32 %s613_s10, 4  ;;  %s341_s11 = int_to_ptr.vmem [resolvable:$true] %s340_s11 }
  0x16   :  { %178 = vmatpush.bf16.msra.mxu0 %v439_v2  ;;  %448 = vmatpush.bf16.msra.mxu1 %v439_v2 }
  0x17   :  { %449 = vmatpush.bf16.msra.mxu2 %v439_v2  ;;  %450 = vmatpush.bf16.msra.mxu3 %v439_v2 }
  0x1a   :  { %179 = vmatpush.bf16.msra.mxu0 %v438_v3  ;;  %451 = vmatpush.bf16.msra.mxu1 %v438_v3 }
  0x1b   :  { %452 = vmatpush.bf16.msra.mxu2 %v438_v3  ;;  %453 = vmatpush.bf16.msra.mxu3 %v438_v3 }
  0x1e   :  { %180 = vmatpush.bf16.msra.mxu0 %v437_v4  ;;  %454 = vmatpush.bf16.msra.mxu1 %v437_v4 }
  0x1f   :  { %455 = vmatpush.bf16.msra.mxu2 %v437_v4  ;;  %456 = vmatpush.bf16.msra.mxu3 %v437_v4 }
  0x22   :  { %181 = vmatpush.bf16.msra.mxu0 %v436_v5  ;;  %457 = vmatpush.bf16.msra.mxu1 %v436_v5 }
  0x23   :  { %458 = vmatpush.bf16.msra.mxu2 %v436_v5  ;;  %459 = vmatpush.bf16.msra.mxu3 %v436_v5 }
  0x26   :  { %182 = vmatpush.bf16.msra.mxu0 %v435_v6  ;;  %460 = vmatpush.bf16.msra.mxu1 %v435_v6 }
  0x27   :  { %461 = vmatpush.bf16.msra.mxu2 %v435_v6  ;;  %462 = vmatpush.bf16.msra.mxu3 %v435_v6 }
  0x2a   :  { %183 = vmatpush.bf16.msra.mxu0 %v434_v7  ;;  %463 = vmatpush.bf16.msra.mxu1 %v434_v7 }
  0x2b   :  { %464 = vmatpush.bf16.msra.mxu2 %v434_v7  ;;  %465 = vmatpush.bf16.msra.mxu3 %v434_v7 }
  0x2d   :  { %184 = vmatmul.bf16.vlgmr.msra.gmra.mxu0 %v426_v8  ;;  %194 = vmatmul.bf16.vlgmr.msra.gmra.mxu1 %v428_v9 }
  0x2e   :  { %204 = vmatmul.bf16.vlgmr.msra.gmra.mxu2 %v430_v10  ;;  %214 = vmatmul.bf16.vlgmr.msra.gmra.mxu3 %v432_v11 }
  0x3d   :  { %189 = vmatmul.bf16.gmra.mxu0 %v427_v12  ;;  %199 = vmatmul.bf16.gmra.mxu1 %v429_v13 }
  0x3e   :  { %209 = vmatmul.bf16.gmra.mxu2 %v431_v14  ;;  %219 = vmatmul.bf16.gmra.mxu3 %v433_v15 }
  0xaa   :  { %v185_v16 = vpop.f32.mrf.mxu0  ;;  %v195_v17 = vpop.f32.mrf.mxu1 }
  0xab   :  { %225 = vst [vmem:[#allocation7] sm:$0xff] %v185_v16  ;;  %v272_v27 = vmul.f32 %v185_v16, %v185_v16  ;;  %v276_v39 = vmul.f32 %v195_v17, %v195_v17 }
  0xac   :  { %229 = vst [vmem:[#allocation7 + $0x20] sm:$0xff] %v195_v17 }
  0xb1   :  { %v205_v18 = vpop.f32.mrf.mxu2  ;;  %v645_v19 = vpop.f32.mrf.mxu3 }
  0xb2   :  { %v187_v20 = vpop.f32.mrf.mxu0  ;;  %v197_v21 = vpop.f32.mrf.mxu1  ;;  %233 = vst [vmem:[#allocation7 + $0x40] sm:$0xff] %v205_v18  ;;  %v280_v54 = vmul.f32 %v205_v18, %v205_v18  ;;  %v284_v2 = vmul.f32 %v645_v19, %v645_v19 }
  0xb3   :  { %226 = vst [vmem:[#allocation7 + $0x8] sm:$0xff] %v187_v20  ;;  %v273_v26 = vmul.f32 %v187_v20, %v187_v20  ;;  %v248_v28 = vadd.f32 %v187_v20, %v185_v16  ;;  %v277_v43 = vmul.f32 %v197_v21, %v197_v21 }
  0xb4   :  { %230 = vst [vmem:[#allocation7 + $0x28] sm:$0xff] %v197_v21 }
  0xb5   :  { %237 = vst [vmem:[#allocation7 + $0x60] sm:$0xff] %v645_v19  ;;  %v288_v30 = vadd.f32 %v273_v26, %v272_v27  ;;  %v271_v27 = vld [vmem:[#allocation10] sm:$0x1] }
  0xb9   :  { %v207_v22 = vpop.f32.mrf.mxu2  ;;  %v648_v23 = vpop.f32.mrf.mxu3 }
  0xba   :  { %v190_v24 = vpop.f32.mrf.mxu0  ;;  %v200_v25 = vpop.f32.mrf.mxu1  ;;  %234 = vst [vmem:[#allocation7 + $0x48] sm:$0xff] %v207_v22  ;;  %v281_v57 = vmul.f32 %v207_v22, %v207_v22  ;;  %v285_v5 = vmul.f32 %v648_v23, %v648_v23 }
  0xbb   :  { %227 = vst [vmem:[#allocation7 + $0x10] sm:$0xff] %v190_v24  ;;  %v274_v29 = vmul.f32 %v190_v24, %v190_v24  ;;  %v249_v31 = vadd.f32 %v248_v28, %v190_v24  ;;  %v278_v46 = vmul.f32 %v200_v25, %v200_v25 }
  0xbc   :  { %231 = vst [vmem:[#allocation7 + $0x30] sm:$0xff] %v200_v25 }
  0xbd   :  { %238 = vst [vmem:[#allocation7 + $0x68] sm:$0xff] %v648_v23  ;;  %v289_v36 = vadd.f32 %v288_v30, %v274_v29 }
  0xc1   :  { %v210_v32 = vpop.f32.mrf.mxu2  ;;  %v220_v33 = vpop.f32.mrf.mxu3 }
  0xc2   :  { %v192_v34 = vpop.f32.mrf.mxu0  ;;  %v202_v35 = vpop.f32.mrf.mxu1  ;;  %235 = vst [vmem:[#allocation7 + $0x50] sm:$0xff] %v210_v32  ;;  %v282_v61 = vmul.f32 %v210_v32, %v210_v32  ;;  %v286_v9 = vmul.f32 %v220_v33, %v220_v33 }
  0xc3   :  { %228 = vst [vmem:[#allocation7 + $0x18] sm:$0xff] %v192_v34  ;;  %v250_v37 = vadd.f32 %v249_v31, %v192_v34  ;;  %v275_v38 = vmul.f32 %v192_v34, %v192_v34  ;;  %v279_v52 = vmul.f32 %v202_v35, %v202_v35 }
  0xc4   :  { %232 = vst [vmem:[#allocation7 + $0x38] sm:$0xff] %v202_v35 }
  0xc5   :  { %v251_v40 = vadd.f32 %v250_v37, %v195_v17  ;;  %v290_v41 = vadd.f32 %v289_v36, %v275_v38  ;;  %239 = vst [vmem:[#allocation7 + $0x70] sm:$0xff] %v220_v33 }
  0xc7   :  { %v291_v44 = vadd.f32 %v290_v41, %v276_v39  ;;  %v252_v45 = vadd.f32 %v251_v40, %v197_v21 }
  0xc9   :  { %v253_v47 = vadd.f32 %v252_v45, %v200_v25  ;;  %v292_v48 = vadd.f32 %v291_v44, %v277_v43  ;;  %v212_v49 = vpop.f32.mrf.mxu2  ;;  %v222_v50 = vpop.f32.mrf.mxu3  ;;  %v247_v25 = vld [vmem:[#allocation8] sm:$0x1] }
  0xca   :  { %236 = vst [vmem:[#allocation7 + $0x58] sm:$0xff] %v212_v49  ;;  %v283_v1 = vmul.f32 %v212_v49, %v212_v49  ;;  %v287_v13 = vmul.f32 %v222_v50, %v222_v50 }
  0xcb   :  { %v254_v51 = vadd.f32 %v253_v47, %v202_v35  ;;  %v293_v53 = vadd.f32 %v292_v48, %v278_v46  ;;  %240 = vst [vmem:[#allocation7 + $0x78] sm:$0xff] %v222_v50 }
  0xcc   :  { %323 = dma.vmem_to_hbm [thread:$0]  %s316_s1, 2048, %s318_s29, [#allocation4], %s610_s30, %s610_s30, %s611_s2  }
  0xcd   :  { %v255_v55 = vadd.f32 %v254_v51, %v205_v18  ;;  %v294_v56 = vadd.f32 %v293_v53, %v279_v52 }
  0xcf   :  { %v295_v58 = vadd.f32 %v294_v56, %v280_v54  ;;  %v256_v59 = vadd.f32 %v255_v55, %v207_v22 }
  0xd1   :  { %v257_v60 = vadd.f32 %v256_v59, %v210_v32  ;;  %v296_v62 = vadd.f32 %v295_v58, %v281_v57 }
  0xd3   :  { %v297_v63 = vadd.f32 %v296_v62, %v282_v61  ;;  %v258_v0 = vadd.f32 %v257_v60, %v212_v49 }
  0xd5   :  { %v259_v3 = vadd.f32 %v258_v0, %v645_v19  ;;  %v298_v4 = vadd.f32 %v297_v63, %v283_v1 }
  0xd7   :  { %v299_v6 = vadd.f32 %v298_v4, %v284_v2  ;;  %v260_v7 = vadd.f32 %v259_v3, %v648_v23 }
  0xd9   :  { %v261_v8 = vadd.f32 %v260_v7, %v220_v33  ;;  %v300_v10 = vadd.f32 %v299_v6, %v285_v5 }
  0xdb   :  { %v301_v11 = vadd.f32 %v300_v10, %v286_v9  ;;  %v262_v12 = vadd.f32 %v261_v8, %v222_v50 }
  0xdd   :  { %v263_v14 = vrot.slane %v262_v12, 4  ;;  %v302_v15 = vadd.f32 %v301_v11, %v287_v13 }
  0xdf   :  { %v264_v16 = vadd.f32 %v263_v14, %v262_v12  ;;  %v303_v17 = vrot.slane %v302_v15, 4 }
  0xe1   :  { %v265_v18 = vrot.slane %v264_v16, 2  ;;  %v304_v20 = vadd.f32 %v303_v17, %v302_v15 }
  0xe3   :  { %v266_v19 = vadd.f32 %v265_v18, %v264_v16  ;;  %v305_v21 = vrot.slane %v304_v20, 2 }
  0xe5   :  { %v267_v22 = vrot.slane %v266_v19, 1  ;;  %v306_v24 = vadd.f32 %v305_v21, %v304_v20 }
  0xe7   :  { %v268_v23 = vadd.f32 %v267_v22, %v266_v19  ;;  %v307_v26 = vrot.slane %v306_v24, 1 }
  0xe9   :  { %v308_v28 = vadd.f32 %v307_v26, %v306_v24  ;;  %v269_v29 = vadd.f32 %v268_v23, %v247_v25 }
  0xeb   :  { %270 = vst [vmem:[#allocation8] sm:$0x1] %v269_v29  ;;  %v309_v30 = vadd.f32 %v308_v28, %v271_v27 }
  0xec   :  { %334 = dma.vmem_to_hbm [thread:$0]  %s330_s6, 16, %s332_s9, [#allocation9]  }
  0xed   :  { %310 = vst [vmem:[#allocation10] sm:$0x1] %v309_v30 }
  0xee   :  { %345 = dma.vmem_to_hbm [thread:$0]  %s341_s11, 16, %s343_s14, [#allocation9]  }
  0xef   :  { %600 = dma.done.wait [#allocation4], 2048  }
  0xf0   :  { %601 = vsyncadd [#allocation4], 4294965248 }
  0xf1   :  { %602 = dma.done.wait [#allocation9], 32  }
  0xf2   :  { %603 = vsyncadd [#allocation9], 4294967264 }
  0xf3   :  { %358 = vsyncpa [#allocation3], 1 }
  0xf4   :  { %359 = vsyncpa [#allocation6], 1 }
  0xf5   :  { %360 = vsyncpa [#allocation4], 1 }
  0xf6   :  { %361 = vsyncpa [#allocation9], 1 }

</bundles_post_ra>
